<compile_context>
chip_gen: v6e
topology: v6e:2x2x1
jax: 0.10.0
libtpu: 0.0.40
codegen_flags: <defaults>
</compile_context>

<pallas_src>
import numpy as np
import jax
import jax.numpy as jnp
from jax import lax
from jax.experimental import pallas as pl
from jax.experimental.pallas import tpu as pltpu  # noqa: F401  (TPU backend)


# MXU operand dtype (accumulation is always f32 via preferred_element_type).
# bf16 halves HBM/VMEM bytes and doubles MXU rate on v6e/v7x; flip to
# jnp.float32 for bit-exact parity with the f32 reference.
MM_DTYPE = jnp.bfloat16
EDGE_TILE = 1024   # rows per edge tile (double-buffered, 'parallel' grid axis)


def _round_up(x, m):
    return ((x + m - 1) // m) * m


# ---------------------------------------------------------------------------
# Small helpers
# ---------------------------------------------------------------------------
def _full_spec(shape):
    n = len(shape)
    return pl.BlockSpec(shape, lambda i, _n=n: (0,) * _n)


def _call(kernel, out_shapes, *arrays):
    """Single-block launch (grid=(1,)) for small fused kernels."""
    single = not isinstance(out_shapes, (tuple, list))
    outs = (out_shapes,) if single else tuple(out_shapes)
    res = pl.pallas_call(
        kernel,
        out_shape=outs,
        grid=(1,),
        in_specs=[_full_spec(a.shape) for a in arrays],
        out_specs=tuple(_full_spec(o.shape) for o in outs),
        compiler_params=pltpu.CompilerParams(dimension_semantics=("arbitrary",)),
    )(*arrays)
    return res[0] if single else res


# ---------------------------------------------------------------------------
# Kernels
# ---------------------------------------------------------------------------
def _message_kernel(l_ref, r_ref, w_ref, b_ref, o_ref):
    # fused (left * right) @ W^T + b  (W pre-transposed; for the merged
    # binfo/dinfo path W is the 2dim x 2dim block-diagonal weight).
    # Elementwise product in f32 (v5e VPU has no bf16); MXU operands in MM_DTYPE.
    m = l_ref[...].astype(jnp.float32) * r_ref[...].astype(jnp.float32)
    o_ref[...] = (jnp.dot(m.astype(w_ref.dtype), w_ref[...],
                          preferred_element_type=jnp.float32) + b_ref[...])


def _edge_message(left, right, w, b, out_cols):
    """Edge-row-tiled launch of _message_kernel: grid over the edge axis so the
    DMA of tile i+1 overlaps compute of tile i, VMEM stays bounded (v7x: 64 MiB),
    and the 'parallel' axis lets v7x's two TensorCores split the rows."""
    E, c = left.shape
    t = int(min(EDGE_TILE, _round_up(max(E, 1), 16)))   # 16: bf16 sublane tile
    return pl.pallas_call(
        _message_kernel,
        out_shape=jax.ShapeDtypeStruct((E, out_cols), jnp.float32),
        grid=(pl.cdiv(E, t),),
        in_specs=[pl.BlockSpec((t, c), lambda i: (i, 0)),
                  pl.BlockSpec((t, c), lambda i: (i, 0)),
                  pl.BlockSpec(w.shape, lambda i: (0, 0)),
                  pl.BlockSpec(b.shape, lambda i: (0, 0))],
        out_specs=pl.BlockSpec((t, out_cols), lambda i: (i, 0)),
        compiler_params=pltpu.CompilerParams(dimension_semantics=("parallel",)),
    )(left, right, w, b)


def _forwardtow_kernel(uidx_ref, iidx_ref,
                       g_ref, gbya_ref, uemb_ref, iemb_ref, rw_ref, bias_ref,
                       o_ref, xsum_ref, gu_ref, gi_ref):
    """Entire forwardtow in one launch: two-hop propagation (intermediates stay
    on-chip), scalar-prefetched indexed row gathers for userB/itemB, fused
    readout.  Output is (B, 1)."""
    f32 = jnp.float32
    g = g_ref[...]
    gb = gbya_ref[...]
    e = uemb_ref[...]
    # compute2 / compute3: G @ (G @ E), Gbya @ (Gbya @ E)  (f32 accumulation)
    # TODO(synk): if user_num grows past ~2k, tile this chain over a k-reduction
    # grid with a VMEM accumulator instead of one full (U, U) block.
    g1 = jnp.dot(g, e, preferred_element_type=f32)
    g2 = jnp.dot(g, g1.astype(g.dtype), preferred_element_type=f32)
    h1 = jnp.dot(gb, e, preferred_element_type=f32)
    h2 = jnp.dot(gb, h1.astype(gb.dtype), preferred_element_type=f32)
    xsum_ref[...] = g2 + h2                                   # (U, dim) f32

    # scalar-prefetched indexed gathers (replaces the O(B*U) one-hot matmuls)
    B = gu_ref.shape[0]
    for b in range(B):                                        # B small & static
        gu_ref[b] = xsum_ref[uidx_ref[b] - 1]                 # (x2+x3)[userB-1]
        gi_ref[b] = iemb_ref[iidx_ref[b] - 1]                 # item_emb[itemB-1]

    prod = gu_ref[...] * gi_ref[...]                          # (B, dim) f32
    s = jnp.sum(prod * rw_ref[...], axis=1, keepdims=True)    # readout -> (B,1)
    o_ref[...] = s + bias_ref[...]                            # + user/item bias


def _ssl_readout_kernel(inp_ref, tgt_ref, gemb_ref, uisum_ref,
                        w1_ref, b1_ref, w2_ref, b2_ref, rw_ref, o_ref):
    """SSL MLP -> readout(ssl_out), readout(target) -> MSE, plus the final graph
    prediction readout(graph_emb) + ui_sum_weight.  Single packed lane-row
    output: [pred_0..pred_{G-1}, loss]."""
    f32 = jnp.float32
    x = inp_ref[...]
    h = jnp.dot(x.astype(w1_ref.dtype), w1_ref[...],
                preferred_element_type=f32) + b1_ref[...]
    h = jnp.maximum(h, 0.0)
    ssl_out = jnp.dot(h.astype(w2_ref.dtype), w2_ref[...],
                      preferred_element_type=f32) + b2_ref[...]

    rw = rw_ref[...]                                           # (1, dim) f32
    outout = lax.dot_general(rw, ssl_out, (((1,), (1,)), ((), ())),
                             preferred_element_type=f32)       # (1, M)
    label = lax.dot_general(rw, tgt_ref[...], (((1,), (1,)), ((), ())),
                            preferred_element_type=f32)        # (1, M)
    d = outout - label
    m = d.shape[1]
    loss = jnp.sum(d * d) * (1.0 / m)                          # scalar MSE

    pred = lax.dot_general(rw, gemb_ref[...], (((1,), (1,)), ((), ())),
                           preferred_element_type=f32) + uisum_ref[...]   # (1, G)
    o_ref[...] = jnp.concatenate([pred, jnp.reshape(loss, (1, 1))], axis=1)


# ---------------------------------------------------------------------------
# Parameter init (deterministic; mirrors the module's __init__ shapes) + prep
# ---------------------------------------------------------------------------
def init_params(key, dim, feature_num, user_num, item_num):
    ks = jax.random.split(key, 12)

    def lin(k, out_f, in_f):
        kw, kb = jax.random.split(k)
        bound = 1.0 / np.sqrt(in_f)
        w = jax.random.uniform(kw, (out_f, in_f), jnp.float32, -bound, bound)
        b = jax.random.uniform(kb, (out_f,), jnp.float32, -bound, bound)
        return w, b

    p = {}
    p['feature_embedding'] = jax.random.normal(ks[0], (feature_num + 1, dim), jnp.float32)
    p['node_weight'] = 0.01 * jax.random.normal(ks[1], (feature_num + 1, 1), jnp.float32)
    p['info_w'], p['info_b'] = lin(ks[2], dim, dim)
    p['binfo_w'], p['binfo_b'] = lin(ks[3], dim, dim)
    p['dinfo_w'], p['dinfo_b'] = lin(ks[4], dim, dim)
    p['ssl1_w'], p['ssl1_b'] = lin(ks[5], 2 * dim, dim)
    p['ssl2_w'], p['ssl2_b'] = lin(ks[6], dim, 2 * dim)
    p['readout_w'] = lin(ks[7], 1, dim)[0]                       # Linear(dim,1,bias=False)
    p['user_bias'] = 0.01 * jax.random.normal(ks[8], (user_num + 1, 1), jnp.float32)
    p['item_bias'] = 0.01 * jax.random.normal(ks[9], (item_num + 1, 1), jnp.float32)
    return p


def prepare_params(params):
    """One-time layout prep: pre-transposed weights, bf16 MXU operands,
    block-diagonal merged binfo/dinfo weight, lane-row biases."""
    dim = params['feature_embedding'].shape[1]
    f32 = jnp.float32
    prep = dict(params)
    prep['info_wT'] = jnp.transpose(params['info_w']).astype(MM_DTYPE)
    prep['info_b2'] = params['info_b'].reshape(1, dim).astype(f32)

    bwT = jnp.transpose(params['binfo_w'])
    dwT = jnp.transpose(params['dinfo_w'])
    z = jnp.zeros((dim, dim), f32)
    prep['bd_wT'] = jnp.concatenate(
        [jnp.concatenate([bwT, z], axis=1),
         jnp.concatenate([z, dwT], axis=1)], axis=0).astype(MM_DTYPE)   # (2dim, 2dim)
    prep['bd_b2'] = jnp.concatenate(
        [params['binfo_b'], params['dinfo_b']]).reshape(1, 2 * dim).astype(f32)

    prep['ssl1_wT'] = jnp.transpose(params['ssl1_w']).astype(MM_DTYPE)
    prep['ssl1_b2'] = params['ssl1_b'].reshape(1, -1).astype(f32)
    prep['ssl2_wT'] = jnp.transpose(params['ssl2_w']).astype(MM_DTYPE)
    prep['ssl2_b2'] = params['ssl2_b'].reshape(1, -1).astype(f32)
    prep['readout_row'] = params['readout_w'].reshape(1, dim).astype(f32)
    return prep


# ---------------------------------------------------------------------------
# Graph normalizations (GCN / generateGfromH): init-time, plain jnp (tiny)
# ---------------------------------------------------------------------------
def build_G(uu):
    H = jnp.asarray(uu, jnp.float32)
    DV = H.sum(1) + 1e-5
    DE = H.sum(0) + 1e-5
    return (DV ** -0.5)[:, None] * H * (DE ** -0.5)[None, :]


def build_Gbya(ua):
    H = jnp.asarray(ua, jnp.float32)
    DV = H.sum(1) + 1e-5
    DE = H.sum(0) + 1e-5
    Gtmp = (DV ** -1.0)[:, None] * H * (DE ** -1.0)[None, :]
    return Gtmp @ H.T


# ---------------------------------------------------------------------------
# forwardtow: single fused Pallas launch (scalar-prefetched userB/itemB)
# ---------------------------------------------------------------------------
def forwardtow(prep, G, Gbya, userB, itemB, u_begin, i_begin, user_num, item_num):
    fe = prep['feature_embedding']
    dim = fe.shape[1]
    user_emb = fe[u_begin:u_begin + user_num].astype(MM_DTYPE)
    item_emb = fe[i_begin:i_begin + item_num].astype(jnp.float32)
    B = userB.shape[0]
    U = user_num

    # Tiny (B,1) bias gathers pre-done in XLA (torch: user_bias(userB)+item_bias(itemB)).
    bias_b = (jnp.take(prep['user_bias'], userB, axis=0)
              + jnp.take(prep['item_bias'], itemB, axis=0)).astype(jnp.float32)

    grid_spec = pltpu.PrefetchScalarGridSpec(
        num_scalar_prefetch=2,
        grid=(1,),
        in_specs=[
            pl.BlockSpec((U, U), lambda i, u, it: (0, 0)),          # G
            pl.BlockSpec((U, U), lambda i, u, it: (0, 0)),          # Gbya
            pl.BlockSpec((U, dim), lambda i, u, it: (0, 0)),        # user_emb
            pl.BlockSpec((item_num, dim), lambda i, u, it: (0, 0)),  # item_emb
            pl.BlockSpec((1, dim), lambda i, u, it: (0, 0)),        # readout row
            pl.BlockSpec((B, 1), lambda i, u, it: (0, 0)),          # pre-gathered bias
        ],
        out_specs=pl.BlockSpec((B, 1), lambda i, u, it: (0, 0)),
        scratch_shapes=[
            pltpu.VMEM((U, dim), jnp.float32),   # x2 + x3
            pltpu.VMEM((B, dim), jnp.float32),   # gathered user rows
            pltpu.VMEM((B, dim), jnp.float32),   # gathered item rows
        ],
    )
    out = pl.pallas_call(
        _forwardtow_kernel,
        out_shape=jax.ShapeDtypeStruct((B, 1), jnp.float32),
        grid_spec=grid_spec,
        compiler_params=pltpu.CompilerParams(dimension_semantics=("arbitrary",)),
    )(userB.astype(jnp.int32), itemB.astype(jnp.int32),
      G.astype(MM_DTYPE), Gbya.astype(MM_DTYPE), user_emb, item_emb,
      prep['readout_row'], bias_b)
    return out.reshape(-1)


# ---------------------------------------------------------------------------
# forwardone: fused message / SSL / readout kernels; ragged pooling in JAX glue
# ---------------------------------------------------------------------------
def segment_mean(vals, seg_ids, num_segments):
    # TODO(synk): PyG scatter-mean (data-dependent segment ids) kept in JAX glue;
    # moving it in-kernel needs a scalar-prefetched per-node offset table.
    s = jax.ops.segment_sum(vals, seg_ids, num_segments=num_segments)
    c = jax.ops.segment_sum(jnp.ones((vals.shape[0], 1), vals.dtype), seg_ids,
                            num_segments=num_segments)
    return jnp.where(c > 0, s / jnp.maximum(c, 1.0), 0.0)


def forwardone(prep, node_ids, batch, y, in_edge, out_edge, seg_in, seg_out,
               sample_key, sample_num, num_graphs):
    N = node_ids.shape[0]
    dim = prep['feature_embedding'].shape[1]
    f32 = jnp.float32

    node_w = jnp.take(prep['node_weight'], node_ids, axis=0).reshape(-1, 1)
    ui_sum_weight = jax.ops.segment_sum(node_w, batch, num_segments=num_graphs)  # (G,1)
    node_emb = jnp.take(prep['feature_embedding'], node_ids, axis=0)             # (N,dim)

    # --- info path: (left*right) @ W^T + b, edge-tiled.
    # TODO(synk): data-dependent edge gathers stay in JAX glue.
    ne_mm = node_emb.astype(MM_DTYPE)
    left = jnp.take(ne_mm, in_edge[0], axis=0)
    right = jnp.take(ne_mm, in_edge[1], axis=0)
    n_info = _edge_message(left, right, prep['info_wT'], prep['info_b2'], dim)
    in_node = segment_mean(n_info, seg_in, N)                                     # (N,dim)

    # --- binfo + dinfo merged into ONE lane-dense (2*dim wide) edge kernel via a
    # block-diagonal weight: 2 gathers instead of 4, one matmul, one output.
    T = jnp.concatenate([node_emb, in_node], axis=1).astype(MM_DTYPE)   # (N, 2dim)
    Ts = jnp.concatenate([in_node, node_emb], axis=1).astype(MM_DTYPE)  # (N, 2dim)
    a = jnp.take(T, out_edge[0], axis=0)                                # (E2, 2dim)
    bm = jnp.take(Ts, out_edge[1], axis=0)                              # (E2, 2dim)
    n_info_bd = _edge_message(a, bm, prep['bd_wT'], prep['bd_b2'], 2 * dim)
    in_node_bd = segment_mean(n_info_bd, seg_out, N)                    # (N, 2dim)
    in_node_b = in_node_bd[:, :dim]
    in_node_d = in_node_bd[:, dim:]

    # trivial 4-way add left to XLA so it fuses with the surrounding segment ops
    ui_gru_output = node_emb + in_node + in_node_b + in_node_d

    nodes_per_graph = jnp.sum(y, axis=1)                                          # (G,)
    graph_emb = segment_mean(ui_gru_output, batch, num_graphs)

    # SSL sampling (torch.rand -> jax.random; deterministic via PRNGKey)
    sample = jax.random.uniform(sample_key, (num_graphs, sample_num))
    sample_index = jnp.floor(sample * nodes_per_graph[:, None].astype(f32))
    offset = jnp.concatenate([jnp.zeros((1,), jnp.int32),
                              jnp.cumsum(nodes_per_graph)[:-1].astype(jnp.int32)]).reshape(-1, 1)
    sample_index = sample_index.astype(jnp.int32) + offset

    target = jnp.take(ui_gru_output, sample_index.reshape(-1), axis=0)
    target = target.reshape(num_graphs, sample_num, dim)
    target = target / nodes_per_graph.reshape(-1, 1, 1).astype(f32)
    inp = (graph_emb[:, None, :] - target).reshape(-1, dim)
    target2 = target.reshape(-1, dim)

    # SSL MLP + both readout matmuls + MSE + final prediction: ONE launch,
    # single packed lane-row output [pred..., loss].
    out = _call(
        _ssl_readout_kernel,
        jax.ShapeDtypeStruct((1, num_graphs + 1), jnp.float32),
        inp.astype(f32), target2.astype(f32),
        graph_emb.astype(f32), ui_sum_weight.reshape(1, -1).astype(f32),
        prep['ssl1_wT'], prep['ssl1_b2'], prep['ssl2_wT'], prep['ssl2_b2'],
        prep['readout_row'])
    pred = out[0, :num_graphs]
    loss = out[0, num_graphs]
    return pred, loss


forwardone_jit = jax.jit(forwardone, static_argnames=('sample_num', 'num_graphs'))
forwardtow_jit = jax.jit(forwardtow,
                         static_argnames=('u_begin', 'i_begin', 'user_num', 'item_num'))


# ---------------------------------------------------------------------------
if __name__ == "__main__":
    dim = 32
    user_num = 8
    item_num = 8
    feature_num = 24
    sample_num = 2
    u_begin, i_begin = 1, 1 + user_num        # stand-ins for the pickle-loaded offsets

    key = jax.random.PRNGKey(0)
    kp, ksample = jax.random.split(key, 2)
    params = init_params(kp, dim, feature_num, user_num, item_num)
    prep = prepare_params(params)

    rng = np.random.RandomState(0)
    uu = (rng.rand(user_num, user_num) < 0.4).astype(np.float32)
    uu = np.maximum(uu, uu.T)                  # uu_matrix (user-user)
    ua = (rng.rand(user_num, 6) < 0.5).astype(np.float32)   # ua_matrix (user-attr)
    G = build_G(uu)
    Gbya = build_Gbya(ua)

    # B-path batch (userB, itemB in 1..num as in the original indexing)
    B = 8
    userB = jnp.asarray(rng.randint(1, user_num + 1, size=B), jnp.int32)
    itemB = jnp.asarray(rng.randint(1, item_num + 1, size=B), jnp.int32)

    # TODO(synk): real data.x / edge_index / edge_attr come from CSV+pickle; here we
    # synthesize a deterministic batch of graphs with the same ragged structure.
    graphs = [(3, 2), (2, 2), (3, 3), (2, 3)]          # (n_user_feat, n_item_feat) per graph
    y_np = np.array(graphs, np.int32)
    nodes_per_graph = y_np.sum(1)
    num_graphs = len(graphs)
    N = int(nodes_per_graph.sum())
    batch_np = np.repeat(np.arange(num_graphs), nodes_per_graph).astype(np.int32)
    node_ids_np = rng.randint(1, feature_num + 1, size=N).astype(np.int32)

    datay = y_np.reshape(-1)                           # [nu0, ni0, nu1, ni1, ...]
    rep_in = np.repeat(datay, datay)                   # per-node in-edge count
    seg_in_np = np.repeat(np.arange(N), rep_in).astype(np.int32)
    swapped = y_np[:, ::-1].reshape(-1)                # [ni0, nu0, ...]
    rep_out = np.repeat(swapped, datay)                # per-node out-edge count
    seg_out_np = np.repeat(np.arange(N), rep_out).astype(np.int32)

    node_graph_start = np.repeat(
        np.concatenate([[0], np.cumsum(nodes_per_graph)[:-1]]), nodes_per_graph)

    def make_edges(seg, rep):
        src = seg.copy()
        dst = np.empty_like(src)
        pos = 0
        for j in range(N):
            g0 = int(node_graph_start[j])
            gn = int(nodes_per_graph[batch_np[j]])
            for t in range(int(rep[j])):
                dst[pos] = g0 + (j - g0 + 1 + t) % gn
                pos += 1
        return np.stack([src, dst]).astype(np.int32)

    in_edge_np = make_edges(seg_in_np, rep_in)
    out_edge_np = make_edges(seg_out_np, rep_out)

    predictAui, sslloss = forwardone_jit(
        prep, jnp.asarray(node_ids_np), jnp.asarray(batch_np), jnp.asarray(y_np),
        jnp.asarray(in_edge_np), jnp.asarray(out_edge_np),
        jnp.asarray(seg_in_np), jnp.asarray(seg_out_np),
        ksample, sample_num=sample_num, num_graphs=num_graphs)
    predictBui = forwardtow_jit(prep, G, Gbya, userB, itemB,
                                u_begin=u_begin, i_begin=i_begin,
                                user_num=user_num, item_num=item_num)

    jax.block_until_ready((predictAui, predictBui, sslloss))
    print("KERNEL_OK")
</pallas_src>

<mosaic_0001>
module attributes {stable_mosaic.version = 11 : i64} {
  func.func @_message_kernel(%arg0: i32, %arg1: memref<64x32xbf16, #tpu.memory_space<vmem>>, %arg2: memref<64x32xbf16, #tpu.memory_space<vmem>>, %arg3: memref<32x32xbf16, #tpu.memory_space<vmem>>, %arg4: memref<1x32xf32, #tpu.memory_space<vmem>>, %arg5: memref<64x32xf32, #tpu.memory_space<vmem>>) attributes {dimension_semantics = [#tpu.dimension_semantics<parallel>], iteration_bounds = array<i64: 1>, scalar_prefetch = 0 : i64, scratch_operands = 0 : i64, tpu.core_type = #tpu.core_type<tc>, window_params = [{transform_indices = @transform_0, window_bounds = array<i64: 64, 32>}, {transform_indices = @transform_1, window_bounds = array<i64: 64, 32>}, {pipeline_mode = #tpu.pipeline_mode<synchronous>, transform_indices = @transform_2, window_bounds = array<i64: 32, 32>}, {pipeline_mode = #tpu.pipeline_mode<synchronous>, transform_indices = @transform_3, window_bounds = array<i64: 1, 32>}, {transform_indices = @transform_4, window_bounds = array<i64: 64, 32>}]} {
    %c0 = arith.constant 0 : index
    %c0_0 = arith.constant 0 : index
    %0 = vector.load %arg1[%c0, %c0_0] : memref<64x32xbf16, #tpu.memory_space<vmem>>, vector<64x32xbf16>
    %1 = arith.extf %0 : vector<64x32xbf16> to vector<64x32xf32>
    %c0_1 = arith.constant 0 : index
    %c0_2 = arith.constant 0 : index
    %2 = vector.load %arg2[%c0_1, %c0_2] : memref<64x32xbf16, #tpu.memory_space<vmem>>, vector<64x32xbf16>
    %3 = arith.extf %2 : vector<64x32xbf16> to vector<64x32xf32>
    %4 = arith.mulf %1, %3 : vector<64x32xf32>
    %5 = arith.truncf %4 : vector<64x32xf32> to vector<64x32xbf16>
    %c0_3 = arith.constant 0 : index
    %c0_4 = arith.constant 0 : index
    %6 = vector.load %arg3[%c0_3, %c0_4] : memref<32x32xbf16, #tpu.memory_space<vmem>>, vector<32x32xbf16>
    %cst = arith.constant dense<0.000000e+00> : vector<64x32xf32>
    %7 = tpu.matmul %5, %6, %cst {dimension_numbers = #tpu.dot_dimension_numbers<[1], [0], [0], [1], [0, 0, 1, 1], [], []>} : vector<64x32xbf16>, vector<32x32xbf16>, vector<64x32xf32> -> vector<64x32xf32>
    %c0_5 = arith.constant 0 : index
    %c0_6 = arith.constant 0 : index
    %8 = vector.load %arg4[%c0_5, %c0_6] : memref<1x32xf32, #tpu.memory_space<vmem>>, vector<1x32xf32>
    %9 = vector.broadcast %8 : vector<1x32xf32> to vector<64x32xf32>
    %10 = arith.addf %7, %9 : vector<64x32xf32>
    %c0_7 = arith.constant 0 : index
    %c0_8 = arith.constant 0 : index
    %11 = vector.load %arg5[%c0_7, %c0_8] : memref<64x32xf32, #tpu.memory_space<vmem>>, vector<64x32xf32>
    tpu.vector_store %arg5[%c0_7, %c0_8], %10 {strides = array<i32>} : memref<64x32xf32, #tpu.memory_space<vmem>>, vector<64x32xf32>,
    return
  }
  func.func @transform_0(%arg0: i32) -> (i32, i32) {
    %c0_i32 = arith.constant 0 : i32
    %c0_i32_0 = arith.constant 0 : i32
    return %arg0, %c0_i32 : i32, i32
  }
  func.func @transform_1(%arg0: i32) -> (i32, i32) {
    %c0_i32 = arith.constant 0 : i32
    %c0_i32_0 = arith.constant 0 : i32
    return %arg0, %c0_i32 : i32, i32
  }
  func.func @transform_2(%arg0: i32) -> (i32, i32) {
    %c0_i32 = arith.constant 0 : i32
    %c0_i32_0 = arith.constant 0 : i32
    %c0_i32_1 = arith.constant 0 : i32
    return %c0_i32, %c0_i32_0 : i32, i32
  }
  func.func @transform_3(%arg0: i32) -> (i32, i32) {
    %c0_i32 = arith.constant 0 : i32
    %c0_i32_0 = arith.constant 0 : i32
    %c0_i32_1 = arith.constant 0 : i32
    return %c0_i32, %c0_i32_0 : i32, i32
  }
  func.func @transform_4(%arg0: i32) -> (i32, i32) {
    %c0_i32 = arith.constant 0 : i32
    %c0_i32_0 = arith.constant 0 : i32
    return %arg0, %c0_i32 : i32, i32
  }
}

module attributes {stable_mosaic.version = 11 : i64} {
  func.func @_message_kernel(%arg0: i32, %arg1: memref<64x64xbf16, #tpu.memory_space<vmem>>, %arg2: memref<64x64xbf16, #tpu.memory_space<vmem>>, %arg3: memref<64x64xbf16, #tpu.memory_space<vmem>>, %arg4: memref<1x64xf32, #tpu.memory_space<vmem>>, %arg5: memref<64x64xf32, #tpu.memory_space<vmem>>) attributes {dimension_semantics = [#tpu.dimension_semantics<parallel>], iteration_bounds = array<i64: 1>, scalar_prefetch = 0 : i64, scratch_operands = 0 : i64, tpu.core_type = #tpu.core_type<tc>, window_params = [{transform_indices = @transform_0, window_bounds = array<i64: 64, 64>}, {transform_indices = @transform_1, window_bounds = array<i64: 64, 64>}, {pipeline_mode = #tpu.pipeline_mode<synchronous>, transform_indices = @transform_2, window_bounds = array<i64: 64, 64>}, {pipeline_mode = #tpu.pipeline_mode<synchronous>, transform_indices = @transform_3, window_bounds = array<i64: 1, 64>}, {transform_indices = @transform_4, window_bounds = array<i64: 64, 64>}]} {
    %c0 = arith.constant 0 : index
    %c0_0 = arith.constant 0 : index
    %0 = vector.load %arg1[%c0, %c0_0] : memref<64x64xbf16, #tpu.memory_space<vmem>>, vector<64x64xbf16>
    %1 = arith.extf %0 : vector<64x64xbf16> to vector<64x64xf32>
    %c0_1 = arith.constant 0 : index
    %c0_2 = arith.constant 0 : index
    %2 = vector.load %arg2[%c0_1, %c0_2] : memref<64x64xbf16, #tpu.memory_space<vmem>>, vector<64x64xbf16>
    %3 = arith.extf %2 : vector<64x64xbf16> to vector<64x64xf32>
    %4 = arith.mulf %1, %3 : vector<64x64xf32>
    %5 = arith.truncf %4 : vector<64x64xf32> to vector<64x64xbf16>
    %c0_3 = arith.constant 0 : index
    %c0_4 = arith.constant 0 : index
    %6 = vector.load %arg3[%c0_3, %c0_4] : memref<64x64xbf16, #tpu.memory_space<vmem>>, vector<64x64xbf16>
    %cst = arith.constant dense<0.000000e+00> : vector<64x64xf32>
    %7 = tpu.matmul %5, %6, %cst {dimension_numbers = #tpu.dot_dimension_numbers<[1], [0], [0], [1], [0, 0, 1, 1], [], []>} : vector<64x64xbf16>, vector<64x64xbf16>, vector<64x64xf32> -> vector<64x64xf32>
    %c0_5 = arith.constant 0 : index
    %c0_6 = arith.constant 0 : index
    %8 = vector.load %arg4[%c0_5, %c0_6] : memref<1x64xf32, #tpu.memory_space<vmem>>, vector<1x64xf32>
    %9 = vector.broadcast %8 : vector<1x64xf32> to vector<64x64xf32>
    %10 = arith.addf %7, %9 : vector<64x64xf32>
    %c0_7 = arith.constant 0 : index
    %c0_8 = arith.constant 0 : index
    %11 = vector.load %arg5[%c0_7, %c0_8] : memref<64x64xf32, #tpu.memory_space<vmem>>, vector<64x64xf32>
    tpu.vector_store %arg5[%c0_7, %c0_8], %10 {strides = array<i32>} : memref<64x64xf32, #tpu.memory_space<vmem>>, vector<64x64xf32>,
    return
  }
  func.func @transform_0(%arg0: i32) -> (i32, i32) {
    %c0_i32 = arith.constant 0 : i32
    %c0_i32_0 = arith.constant 0 : i32
    return %arg0, %c0_i32 : i32, i32
  }
  func.func @transform_1(%arg0: i32) -> (i32, i32) {
    %c0_i32 = arith.constant 0 : i32
    %c0_i32_0 = arith.constant 0 : i32
    return %arg0, %c0_i32 : i32, i32
  }
  func.func @transform_2(%arg0: i32) -> (i32, i32) {
    %c0_i32 = arith.constant 0 : i32
    %c0_i32_0 = arith.constant 0 : i32
    %c0_i32_1 = arith.constant 0 : i32
    return %c0_i32, %c0_i32_0 : i32, i32
  }
  func.func @transform_3(%arg0: i32) -> (i32, i32) {
    %c0_i32 = arith.constant 0 : i32
    %c0_i32_0 = arith.constant 0 : i32
    %c0_i32_1 = arith.constant 0 : i32
    return %c0_i32, %c0_i32_0 : i32, i32
  }
  func.func @transform_4(%arg0: i32) -> (i32, i32) {
    %c0_i32 = arith.constant 0 : i32
    %c0_i32_0 = arith.constant 0 : i32
    return %arg0, %c0_i32 : i32, i32
  }
}

module attributes {stable_mosaic.version = 11 : i64} {
  func.func @_ssl_readout_kernel(%arg0: i32, %arg1: memref<8x32xf32, #tpu.memory_space<vmem>>, %arg2: memref<8x32xf32, #tpu.memory_space<vmem>>, %arg3: memref<4x32xf32, #tpu.memory_space<vmem>>, %arg4: memref<1x4xf32, #tpu.memory_space<vmem>>, %arg5: memref<32x64xbf16, #tpu.memory_space<vmem>>, %arg6: memref<1x64xf32, #tpu.memory_space<vmem>>, %arg7: memref<64x32xbf16, #tpu.memory_space<vmem>>, %arg8: memref<1x32xf32, #tpu.memory_space<vmem>>, %arg9: memref<1x32xf32, #tpu.memory_space<vmem>>, %arg10: memref<1x5xf32, #tpu.memory_space<vmem>>) attributes {dimension_semantics = [#tpu.dimension_semantics<arbitrary>], iteration_bounds = array<i64: 1>, scalar_prefetch = 0 : i64, scratch_operands = 0 : i64, tpu.core_type = #tpu.core_type<tc>, window_params = [{pipeline_mode = #tpu.pipeline_mode<synchronous>, transform_indices = @transform_0, window_bounds = array<i64: 8, 32>}, {pipeline_mode = #tpu.pipeline_mode<synchronous>, transform_indices = @transform_1, window_bounds = array<i64: 8, 32>}, {pipeline_mode = #tpu.pipeline_mode<synchronous>, transform_indices = @transform_2, window_bounds = array<i64: 4, 32>}, {pipeline_mode = #tpu.pipeline_mode<synchronous>, transform_indices = @transform_3, window_bounds = array<i64: 1, 4>}, {pipeline_mode = #tpu.pipeline_mode<synchronous>, transform_indices = @transform_4, window_bounds = array<i64: 32, 64>}, {pipeline_mode = #tpu.pipeline_mode<synchronous>, transform_indices = @transform_5, window_bounds = array<i64: 1, 64>}, {pipeline_mode = #tpu.pipeline_mode<synchronous>, transform_indices = @transform_6, window_bounds = array<i64: 64, 32>}, {pipeline_mode = #tpu.pipeline_mode<synchronous>, transform_indices = @transform_7, window_bounds = array<i64: 1, 32>}, {pipeline_mode = #tpu.pipeline_mode<synchronous>, transform_indices = @transform_8, window_bounds = array<i64: 1, 32>}, {pipeline_mode = #tpu.pipeline_mode<synchronous>, transform_indices = @transform_9, window_bounds = array<i64: 1, 5>}]} {
    %c0 = arith.constant 0 : index
    %c0_0 = arith.constant 0 : index
    %0 = vector.load %arg1[%c0, %c0_0] : memref<8x32xf32, #tpu.memory_space<vmem>>, vector<8x32xf32>
    %1 = arith.truncf %0 : vector<8x32xf32> to vector<8x32xbf16>
    %c0_1 = arith.constant 0 : index
    %c0_2 = arith.constant 0 : index
    %2 = vector.load %arg5[%c0_1, %c0_2] : memref<32x64xbf16, #tpu.memory_space<vmem>>, vector<32x64xbf16>
    %cst = arith.constant dense<0.000000e+00> : vector<8x64xf32>
    %3 = tpu.matmul %1, %2, %cst {dimension_numbers = #tpu.dot_dimension_numbers<[1], [0], [0], [1], [0, 0, 1, 1], [], []>} : vector<8x32xbf16>, vector<32x64xbf16>, vector<8x64xf32> -> vector<8x64xf32>
    %c0_3 = arith.constant 0 : index
    %c0_4 = arith.constant 0 : index
    %4 = vector.load %arg6[%c0_3, %c0_4] : memref<1x64xf32, #tpu.memory_space<vmem>>, vector<1x64xf32>
    %5 = vector.broadcast %4 : vector<1x64xf32> to vector<8x64xf32>
    %6 = arith.addf %3, %5 : vector<8x64xf32>
    %cst_5 = arith.constant 0.000000e+00 : f32
    %7 = vector.broadcast %cst_5 : f32 to vector<8x64xf32>
    %8 = arith.maximumf %6, %7 : vector<8x64xf32>
    %9 = arith.truncf %8 : vector<8x64xf32> to vector<8x64xbf16>
    %c0_6 = arith.constant 0 : index
    %c0_7 = arith.constant 0 : index
    %10 = vector.load %arg7[%c0_6, %c0_7] : memref<64x32xbf16, #tpu.memory_space<vmem>>, vector<64x32xbf16>
    %cst_8 = arith.constant dense<0.000000e+00> : vector<8x32xf32>
    %11 = tpu.matmul %9, %10, %cst_8 {dimension_numbers = #tpu.dot_dimension_numbers<[1], [0], [0], [1], [0, 0, 1, 1], [], []>} : vector<8x64xbf16>, vector<64x32xbf16>, vector<8x32xf32> -> vector<8x32xf32>
    %c0_9 = arith.constant 0 : index
    %c0_10 = arith.constant 0 : index
    %12 = vector.load %arg8[%c0_9, %c0_10] : memref<1x32xf32, #tpu.memory_space<vmem>>, vector<1x32xf32>
    %13 = vector.broadcast %12 : vector<1x32xf32> to vector<8x32xf32>
    %14 = arith.addf %11, %13 : vector<8x32xf32>
    %c0_11 = arith.constant 0 : index
    %c0_12 = arith.constant 0 : index
    %15 = vector.load %arg9[%c0_11, %c0_12] : memref<1x32xf32, #tpu.memory_space<vmem>>, vector<1x32xf32>
    %cst_13 = arith.constant dense<0.000000e+00> : vector<1x8xf32>
    %16 = tpu.matmul %15, %14, %cst_13 {dimension_numbers = #tpu.dot_dimension_numbers<[1], [1], [0], [0], [0, 0, 1, 0], [], []>} : vector<1x32xf32>, vector<8x32xf32>, vector<1x8xf32> -> vector<1x8xf32>
    %c0_14 = arith.constant 0 : index
    %c0_15 = arith.constant 0 : index
    %17 = vector.load %arg2[%c0_14, %c0_15] : memref<8x32xf32, #tpu.memory_space<vmem>>, vector<8x32xf32>
    %cst_16 = arith.constant dense<0.000000e+00> : vector<1x8xf32>
    %18 = tpu.matmul %15, %17, %cst_16 {dimension_numbers = #tpu.dot_dimension_numbers<[1], [1], [0], [0], [0, 0, 1, 0], [], []>} : vector<1x32xf32>, vector<8x32xf32>, vector<1x8xf32> -> vector<1x8xf32>
    %19 = arith.subf %16, %18 : vector<1x8xf32>
    %20 = arith.mulf %19, %19 : vector<1x8xf32>
    %21 = vector.shape_cast %20 : vector<1x8xf32> to vector<1x1x8xf32>
    %cst_17 = arith.constant dense<0.000000e+00> : vector<1xf32>
    %22 = vector.multi_reduction <add>, %21, %cst_17 [1, 2] : vector<1x1x8xf32> to vector<1xf32>
    %23 = vector.shape_cast %22 : vector<1xf32> to vector<1x1x1xf32>
    %24 = vector.extract %23[0, 0, 0] : f32 from vector<1x1x1xf32>
    %cst_18 = arith.constant 1.250000e-01 : f32
    %25 = arith.mulf %24, %cst_18 : f32
    %c0_19 = arith.constant 0 : index
    %c0_20 = arith.constant 0 : index
    %26 = vector.load %arg3[%c0_19, %c0_20] : memref<4x32xf32, #tpu.memory_space<vmem>>, vector<4x32xf32>
    %cst_21 = arith.constant dense<0.000000e+00> : vector<1x4xf32>
    %27 = tpu.matmul %15, %26, %cst_21 {dimension_numbers = #tpu.dot_dimension_numbers<[1], [1], [0], [0], [0, 0, 1, 0], [], []>} : vector<1x32xf32>, vector<4x32xf32>, vector<1x4xf32> -> vector<1x4xf32>
    %c0_22 = arith.constant 0 : index
    %c0_23 = arith.constant 0 : index
    %28 = vector.load %arg4[%c0_22, %c0_23] : memref<1x4xf32, #tpu.memory_space<vmem>>, vector<1x4xf32>
    %29 = arith.addf %27, %28 : vector<1x4xf32>
    %30 = vector.broadcast %25 : f32 to vector<1x1xf32>
    %31 = tpu.concatenate %29, %30 in 1 : vector<1x4xf32>, vector<1x1xf32> -> vector<1x5xf32>
    %c0_24 = arith.constant 0 : index
    %c0_25 = arith.constant 0 : index
    %32 = vector.load %arg10[%c0_24, %c0_25] : memref<1x5xf32, #tpu.memory_space<vmem>>, vector<1x5xf32>
    tpu.vector_store %arg10[%c0_24, %c0_25], %31 {strides = array<i32>} : memref<1x5xf32, #tpu.memory_space<vmem>>, vector<1x5xf32>,
    return
  }
  func.func @transform_0(%arg0: i32) -> (i32, i32) {
    %c0_i32 = arith.constant 0 : i32
    %c0_i32_0 = arith.constant 0 : i32
    %c0_i32_1 = arith.constant 0 : i32
    return %c0_i32, %c0_i32_0 : i32, i32
  }
  func.func @transform_1(%arg0: i32) -> (i32, i32) {
    %c0_i32 = arith.constant 0 : i32
    %c0_i32_0 = arith.constant 0 : i32
    %c0_i32_1 = arith.constant 0 : i32
    return %c0_i32, %c0_i32_0 : i32, i32
  }
  func.func @transform_2(%arg0: i32) -> (i32, i32) {
    %c0_i32 = arith.constant 0 : i32
    %c0_i32_0 = arith.constant 0 : i32
    %c0_i32_1 = arith.constant 0 : i32
    return %c0_i32, %c0_i32_0 : i32, i32
  }
  func.func @transform_3(%arg0: i32) -> (i32, i32) {
    %c0_i32 = arith.constant 0 : i32
    %c0_i32_0 = arith.constant 0 : i32
    %c0_i32_1 = arith.constant 0 : i32
    return %c0_i32, %c0_i32_0 : i32, i32
  }
  func.func @transform_4(%arg0: i32) -> (i32, i32) {
    %c0_i32 = arith.constant 0 : i32
    %c0_i32_0 = arith.constant 0 : i32
    %c0_i32_1 = arith.constant 0 : i32
    return %c0_i32, %c0_i32_0 : i32, i32
  }
  func.func @transform_5(%arg0: i32) -> (i32, i32) {
    %c0_i32 = arith.constant 0 : i32
    %c0_i32_0 = arith.constant 0 : i32
    %c0_i32_1 = arith.constant 0 : i32
    return %c0_i32, %c0_i32_0 : i32, i32
  }
  func.func @transform_6(%arg0: i32) -> (i32, i32) {
    %c0_i32 = arith.constant 0 : i32
    %c0_i32_0 = arith.constant 0 : i32
    %c0_i32_1 = arith.constant 0 : i32
    return %c0_i32, %c0_i32_0 : i32, i32
  }
  func.func @transform_7(%arg0: i32) -> (i32, i32) {
    %c0_i32 = arith.constant 0 : i32
    %c0_i32_0 = arith.constant 0 : i32
    %c0_i32_1 = arith.constant 0 : i32
    return %c0_i32, %c0_i32_0 : i32, i32
  }
  func.func @transform_8(%arg0: i32) -> (i32, i32) {
    %c0_i32 = arith.constant 0 : i32
    %c0_i32_0 = arith.constant 0 : i32
    %c0_i32_1 = arith.constant 0 : i32
    return %c0_i32, %c0_i32_0 : i32, i32
  }
  func.func @transform_9(%arg0: i32) -> (i32, i32) {
    %c0_i32 = arith.constant 0 : i32
    %c0_i32_0 = arith.constant 0 : i32
    %c0_i32_1 = arith.constant 0 : i32
    return %c0_i32, %c0_i32_0 : i32, i32
  }
}

</mosaic_0001>

<bundles_post_ra>
// kernel: forwardone.4
= control target key start
LH: loop header
LB: loop body
LE: loop exit
PB: predicated region body
PF: predicated region fallthrough
CT: control target
= control target key end

     0   :  { %vm101_vm0 = vcmask 523264   ;;  %s431_s0 = inlined_call_operand.vmem [shape: bf16[50,64], index: 0, kind: input, shape index: {}]   ;;  %s432_s1 = inlined_call_operand.vmem [shape: bf16[50,64], index: 1, kind: input, shape index: {}]   ;;  %s433_s2 = inlined_call_operand.vmem [shape: bf16[64,64], index: 2, kind: input, shape index: {}]   ;;  %s434_s3 = inlined_call_operand.vmem [shape: f32[1,64], index: 3, kind: input, shape index: {}]   ;;  %s435_s4 = inlined_call_operand.vmem [shape: f32[50,64], index: 4, kind: output, shape index: {}]  }
   0x1   :  { %v331_v0 = vld [vmem:[%s433_s2 + $0x18] sm:$0xff]   ;;  %v332_v1 = vld [vmem:[%s433_s2 + $0x10] sm:$0xff]   ;;  %v333_v2 = vld [vmem:[%s433_s2 + $0x8] sm:$0xff]  }
   0x2   :  { %307 = vmatprep.subr.bf16.mxu0 %v331_v0  ;;  %323 = vmatprep.subr.bf16.mxu1 %v331_v0  ;;  %v262_v3 = vld [vmem:[%s431_s0] sm:$0xff]   ;;  %v294_v5 = vld [vmem:[%s431_s0 + $0x10] sm:$0xff]   ;;  %v293_v11 = vld [vmem:[%s431_s0 + $0x8] sm:$0xff]  }
   0x3   :  { %308 = vmatpush3.bf16.msra.mxu0 %v331_v0  ;;  %327 = vmatpush3.bf16.msra.mxu1 %v331_v0  ;;  %v278_v4 = vld [vmem:[%s432_s1] sm:$0xff]   ;;  %v263_v6 = vunpack.c.l.bf16 %v262_v3  ;;  %v264_v7 = vunpack.c.h.bf16 %v262_v3  ;;  %v297_v10 = vld [vmem:[%s432_s1 + $0x10] sm:$0xff]   ;;  %v296_v12 = vld [vmem:[%s432_s1 + $0x8] sm:$0xff]   ;;  %v271_v13 = vunpack.c.l.bf16 %v294_v5  ;;  %v272_v14 = vunpack.c.h.bf16 %v294_v5 }
   0x4   :  { %309 = vmatprep.subr.bf16.mxu0 %v332_v1  ;;  %324 = vmatprep.subr.bf16.mxu1 %v332_v1  ;;  %v279_v8 = vunpack.c.l.bf16 %v278_v4  ;;  %v280_v9 = vunpack.c.h.bf16 %v278_v4  ;;  %v287_v15 = vunpack.c.l.bf16 %v297_v10  ;;  %v288_v16 = vunpack.c.h.bf16 %v297_v10  ;;  %v295_v17 = vld [vmem:[%s431_s0 + $0x18] sm:$0xff]   ;;  %v334_v23 = vld [vmem:[%s433_s2] sm:$0xff]  }
   0x5   :  { %v298_v18 = vld [vmem:[%s432_s1 + $0x18] sm:$0xff]   ;;  %v267_v21 = vunpack.c.l.bf16 %v293_v11  ;;  %v268_v22 = vunpack.c.h.bf16 %v293_v11  ;;  %v283_v26 = vunpack.c.l.bf16 %v296_v12  ;;  %v284_v27 = vunpack.c.h.bf16 %v296_v12  ;;  %v252_v40 = vld [vmem:[%s434_s3] ss:$0 sm:$0xff] }
   0x6   :  { %v50_v19 = vmul.f32 %v279_v8, %v263_v6  ;;  %v51_v20 = vmul.f32 %v280_v9, %v264_v7  ;;  %v54_v24 = vmul.f32 %v287_v15, %v271_v13  ;;  %v55_v25 = vmul.f32 %v288_v16, %v272_v14 }
   0x7   :  { %310 = vmatpush3.bf16.msra.mxu0 %v332_v1  ;;  %328 = vmatpush3.bf16.msra.mxu1 %v332_v1  ;;  %v275_v29 = vunpack.c.l.bf16 %v295_v17  ;;  %v276_v30 = vunpack.c.h.bf16 %v295_v17  ;;  %v291_v31 = vunpack.c.l.bf16 %v298_v18  ;;  %v52_v33 = vmul.f32 %v283_v26, %v267_v21 }
   0x8   :  { %311 = vmatprep.subr.bf16.mxu0 %v333_v2  ;;  %325 = vmatprep.subr.bf16.mxu1 %v333_v2  ;;  %v58_v28 = vpack.c.bf16 %v51_v20, %v50_v19  ;;  %v60_v32 = vpack.c.bf16 %v55_v25, %v54_v24  ;;  %v53_v34 = vmul.f32 %v284_v27, %v268_v22  ;;  %v292_v35 = vunpack.c.h.bf16 %v298_v18 }
   0x9   :  { %v56_v36 = vmul.f32 %v291_v31, %v275_v29 }
   0xa   :  { %v57_v37 = vmul.f32 %v292_v35, %v276_v30  ;;  %315 = vmatprep.mubr.msk.bf16.mxu0 %vm101_vm0, %v58_v28  ;;  %319 = vmatprep.mubr.msk.bf16.mxu1 %vm101_vm0, %v60_v32  ;;  %v59_v38 = vpack.c.bf16 %v53_v34, %v52_v33 }
   0xb   :  { %312 = vmatpush3.bf16.msra.mxu0 %v333_v2  ;;  %329 = vmatpush3.bf16.msra.mxu1 %v333_v2 }
   0xc   :  { %313 = vmatprep.subr.bf16.mxu0 %v334_v23  ;;  %326 = vmatprep.subr.bf16.mxu1 %v334_v23  ;;  %v61_v39 = vpack.c.bf16 %v57_v37, %v56_v36 }
   0xf   :  { %314 = vmatpush3.bf16.msra.mxu0 %v334_v23  ;;  %330 = vmatpush3.bf16.msra.mxu1 %v334_v23 }
  0x12   :  { %316 = vmatmul.mubr.msk.bf16.vlgmr.msra.gmra.mxu0 %vm101_vm0, %v59_v38  ;;  %320 = vmatmul.mubr.msk.bf16.vlgmr.msra.gmra.mxu1 %vm101_vm0, %v61_v39 }
  0xd2   :  { %v317_v41 = vpop.f32.mrf.mxu0  ;;  %v321_v42 = vpop.f32.mrf.mxu1 }
  0xd3   :  { %v157_v43 = vadd.f32 %v317_v41, %v252_v40  ;;  %v173_v44 = vadd.f32 %v321_v42, %v252_v40 }
  0xd4   :  { %v148_v45 = vpop.f32.mrf.mxu0  ;;  %v164_v46 = vpop.f32.mrf.mxu1 }
  0xd5   :  { %181 = vst.msk [vmem:[#allocation2 + $0x10] sm:$0xff] %vm101_vm0, %v157_v43  ;;  %185 = vst.msk [vmem:[#allocation2 + $0x30] sm:$0xff] %vm101_vm0, %v173_v44  ;;  %v149_v47 = vadd.f32 %v252_v40, %v148_v45  ;;  %v165_v48 = vadd.f32 %v252_v40, %v164_v46 }
  0xd6   :  { %v318_v49 = vpop.f32.mrf.mxu0  ;;  %v322_v50 = vpop.f32.mrf.mxu1 }
  0xd7   :  { %179 = vst.msk [vmem:[#allocation2] sm:$0xff] %vm101_vm0, %v149_v47  ;;  %183 = vst.msk [vmem:[#allocation2 + $0x20] sm:$0xff] %vm101_vm0, %v165_v48  ;;  %v160_v51 = vadd.f32 %v318_v49, %v252_v40 }
  0xd8   :  { %v151_v52 = vpop.f32.mrf.mxu0  ;;  %v167_v53 = vpop.f32.mrf.mxu1 }
  0xd9   :  { %182 = vst.msk [vmem:[#allocation2 + $0x18] sm:$0xff] %vm101_vm0, %v160_v51  ;;  %v152_v54 = vadd.f32 %v252_v40, %v151_v52  ;;  %v168_v55 = vadd.f32 %v252_v40, %v167_v53 }
  0xdb   :  { %180 = vst.msk [vmem:[#allocation2 + $0x8] sm:$0xff] %vm101_vm0, %v152_v54  ;;  %184 = vst.msk [vmem:[#allocation2 + $0x28] sm:$0xff] %vm101_vm0, %v168_v55 }
  0xdc   :  { %v233_v56 = vld [vmem:[#allocation2 + $0x10] sm:$0xff] }
  0xdd   :  { %v241_v57 = vld [vmem:[#allocation2 + $0x30] sm:$0xff]  ;;  %234 = vst [vmem:[%s435_s4 + $0x10] sm:$0xff] %v233_v56 }
  0xde   :  { %242 = vst [vmem:[%s435_s4 + $0x30] sm:$0xff] %v241_v57  ;;  %v229_v58 = vld [vmem:[#allocation2] sm:$0xff] }
  0xdf   :  { %v237_v59 = vld [vmem:[#allocation2 + $0x20] sm:$0xff]  ;;  %230 = vst [vmem:[%s435_s4] sm:$0xff] %v229_v58 }
  0xe0   :  { %238 = vst [vmem:[%s435_s4 + $0x20] sm:$0xff] %v237_v59  ;;  %v235_v60 = vld [vmem:[#allocation2 + $0x18] sm:$0xff] }
  0xe1   :  { %236 = vst [vmem:[%s435_s4 + $0x18] sm:$0xff] %v235_v60 }
  0xe2   :  { %v231_v61 = vld [vmem:[#allocation2 + $0x8] sm:$0xff] }
  0xe3   :  { %v239_v62 = vld [vmem:[#allocation2 + $0x28] sm:$0xff]  ;;  %232 = vst [vmem:[%s435_s4 + $0x8] sm:$0xff] %v231_v61 }
  0xe4   :  { %240 = vst [vmem:[%s435_s4 + $0x28] sm:$0xff] %v239_v62 }

// kernel: forwardone.3
= control target key start
LH: loop header
LB: loop body
LE: loop exit
PB: predicated region body
PF: predicated region fallthrough
CT: control target
= control target key end

     0   :  { %vm85_vm0 = vcmask 261120   ;;  %s395_s0 = inlined_call_operand.vmem [shape: bf16[52,32], index: 0, kind: input, shape index: {}]   ;;  %s396_s1 = inlined_call_operand.vmem [shape: bf16[52,32], index: 1, kind: input, shape index: {}]   ;;  %s397_s2 = inlined_call_operand.vmem [shape: bf16[32,32], index: 2, kind: input, shape index: {}]   ;;  %s398_s3 = inlined_call_operand.vmem [shape: f32[1,32], index: 3, kind: input, shape index: {}]   ;;  %s399_s4 = inlined_call_operand.vmem [shape: f32[52,32], index: 4, kind: output, shape index: {}]  }
   0x1   :  { %v303_v0 = vld [vmem:[%s397_s2 + $0x8] sm:$0xff]   ;;  %v304_v1 = vld [vmem:[%s397_s2] sm:$0xff]   ;;  %v276_v4 = vld [vmem:[%s395_s0 + $0x10] sm:$0xff]  }
   0x2   :  { %287 = vmatprep.subr.bf16.mxu0 %v303_v0  ;;  %299 = vmatprep.subr.bf16.mxu1 %v303_v0  ;;  %v244_v2 = vld [vmem:[%s395_s0] sm:$0xff]   ;;  %v279_v9 = vld [vmem:[%s396_s1 + $0x10] sm:$0xff]   ;;  %v275_v10 = vld [vmem:[%s395_s0 + $0x8] sm:$0xff]   ;;  %v253_v12 = vunpack.c.l.bf16 %v276_v4  ;;  %v254_v13 = vunpack.c.h.bf16 %v276_v4 }
   0x3   :  { %v260_v3 = vld [vmem:[%s396_s1] sm:$0xff]   ;;  %288 = vmatpush3.bf16.msra.mxu0 %v303_v0  ;;  %301 = vmatpush3.bf16.msra.mxu1 %v303_v0  ;;  %v245_v5 = vunpack.c.l.bf16 %v244_v2  ;;  %v246_v6 = vunpack.c.h.bf16 %v244_v2  ;;  %v278_v11 = vld [vmem:[%s396_s1 + $0x8] sm:$0xff]   ;;  %v269_v14 = vunpack.c.l.bf16 %v279_v9  ;;  %v270_v15 = vunpack.c.h.bf16 %v279_v9  ;;  %v277_v16 = vld [vmem:[%s395_s0 + $0x18] sm:$0xff]  }
   0x4   :  { %v261_v7 = vunpack.c.l.bf16 %v260_v3  ;;  %v262_v8 = vunpack.c.h.bf16 %v260_v3  ;;  %289 = vmatprep.subr.bf16.mxu0 %v304_v1  ;;  %300 = vmatprep.subr.bf16.mxu1 %v304_v1  ;;  %v280_v17 = vld [vmem:[%s396_s1 + $0x18] sm:$0xff]   ;;  %v249_v20 = vunpack.c.l.bf16 %v275_v10  ;;  %v250_v21 = vunpack.c.h.bf16 %v275_v10  ;;  %v236_v38 = vld [vmem:[%s398_s3] ss:$0 sm:$0xff] }
   0x5   :  { %v54_v22 = vmul.f32 %v269_v14, %v253_v12  ;;  %v55_v23 = vmul.f32 %v270_v15, %v254_v13  ;;  %v265_v24 = vunpack.c.l.bf16 %v278_v11  ;;  %v266_v25 = vunpack.c.h.bf16 %v278_v11 }
   0x6   :  { %v50_v18 = vmul.f32 %v261_v7, %v245_v5  ;;  %v51_v19 = vmul.f32 %v262_v8, %v246_v6  ;;  %v257_v27 = vunpack.c.l.bf16 %v277_v16  ;;  %v258_v28 = vunpack.c.h.bf16 %v277_v16 }
   0x7   :  { %290 = vmatpush3.bf16.msra.mxu0 %v304_v1  ;;  %302 = vmatpush3.bf16.msra.mxu1 %v304_v1  ;;  %v273_v29 = vunpack.c.l.bf16 %v280_v17  ;;  %v60_v30 = vpack.c.bf16 %v55_v23, %v54_v22  ;;  %v52_v31 = vmul.f32 %v265_v24, %v249_v20  ;;  %v53_v32 = vmul.f32 %v266_v25, %v250_v21 }
   0x8   :  { %v58_v26 = vpack.c.bf16 %v51_v19, %v50_v18  ;;  %v274_v33 = vunpack.c.h.bf16 %v280_v17 }
   0x9   :  { %v56_v34 = vmul.f32 %v273_v29, %v257_v27  ;;  %295 = vmatprep.mubr.msk.bf16.mxu1 %vm85_vm0, %v60_v30  ;;  %v59_v35 = vpack.c.bf16 %v53_v32, %v52_v31 }
   0xa   :  { %291 = vmatprep.mubr.msk.bf16.mxu0 %vm85_vm0, %v58_v26  ;;  %v57_v36 = vmul.f32 %v274_v33, %v258_v28 }
   0xb   :  { %292 = vmatmul.mubr.msk.bf16.vlgmr.msra.gmra.mxu0 %vm85_vm0, %v59_v35 }
   0xc   :  { %v61_v37 = vpack.c.bf16 %v57_v36, %v56_v34 }
   0xe   :  { %296 = vmatmul.mubr.msk.bf16.vlgmr.msra.gmra.mxu1 %vm85_vm0, %v61_v37 }
  0xcb   :  { %v293_v39 = vpop.f32.mrf.mxu0 }
  0xcc   :  { %v141_v40 = vadd.f32 %v293_v39, %v236_v38 }
  0xcd   :  { %v132_v42 = vpop.f32.mrf.mxu0 }
  0xce   :  { %v297_v41 = vpop.f32.mrf.mxu1  ;;  %165 = vst.msk [vmem:[#allocation2 + $0x10] sm:$0xff] %vm85_vm0, %v141_v40  ;;  %v133_v44 = vadd.f32 %v236_v38, %v132_v42 }
  0xcf   :  { %v157_v43 = vadd.f32 %v297_v41, %v236_v38  ;;  %v294_v46 = vpop.f32.mrf.mxu0 }
  0xd0   :  { %v148_v45 = vpop.f32.mrf.mxu1  ;;  %163 = vst.msk [vmem:[#allocation2] sm:$0xff] %vm85_vm0, %v133_v44  ;;  %v144_v48 = vadd.f32 %v294_v46, %v236_v38 }
  0xd1   :  { %169 = vst.msk [vmem:[#allocation2 + $0x30] sm:$0xff] %vm85_vm0, %v157_v43  ;;  %v149_v47 = vadd.f32 %v236_v38, %v148_v45  ;;  %v135_v50 = vpop.f32.mrf.mxu0 }
  0xd2   :  { %v298_v49 = vpop.f32.mrf.mxu1  ;;  %166 = vst.msk [vmem:[#allocation2 + $0x18] sm:$0xff] %vm85_vm0, %v144_v48  ;;  %v136_v51 = vadd.f32 %v236_v38, %v135_v50 }
  0xd3   :  { %167 = vst.msk [vmem:[#allocation2 + $0x20] sm:$0xff] %vm85_vm0, %v149_v47 }
  0xd4   :  { %v151_v52 = vpop.f32.mrf.mxu1  ;;  %164 = vst.msk [vmem:[#allocation2 + $0x8] sm:$0xff] %vm85_vm0, %v136_v51 }
  0xd5   :  { %v152_v53 = vadd.f32 %v236_v38, %v151_v52  ;;  %v217_v54 = vld [vmem:[#allocation2 + $0x10] sm:$0xff] }
  0xd6   :  { %218 = vst [vmem:[%s399_s4 + $0x10] sm:$0xff] %v217_v54 }
  0xd7   :  { %168 = vst.msk [vmem:[#allocation2 + $0x28] sm:$0xff] %vm85_vm0, %v152_v53  ;;  %v213_v56 = vld [vmem:[#allocation2] sm:$0xff] }
  0xd8   :  { %v225_v55 = vld [vmem:[#allocation2 + $0x30] sm:$0xff]  ;;  %214 = vst [vmem:[%s399_s4] sm:$0xff] %v213_v56 }
  0xd9   :  { %226 = vst [vmem:[%s399_s4 + $0x30] sm:$0xff] %v225_v55  ;;  %v219_v58 = vld [vmem:[#allocation2 + $0x18] sm:$0xff] }
  0xda   :  { %v221_v57 = vld [vmem:[#allocation2 + $0x20] sm:$0xff]  ;;  %220 = vst [vmem:[%s399_s4 + $0x18] sm:$0xff] %v219_v58 }
  0xdb   :  { %222 = vst [vmem:[%s399_s4 + $0x20] sm:$0xff] %v221_v57  ;;  %v215_v59 = vld [vmem:[#allocation2 + $0x8] sm:$0xff] }
  0xdc   :  { %216 = vst [vmem:[%s399_s4 + $0x8] sm:$0xff] %v215_v59 }
  0xde   :  { %v223_v60 = vld [vmem:[#allocation2 + $0x28] sm:$0xff] }
  0xdf   :  { %224 = vst [vmem:[%s399_s4 + $0x28] sm:$0xff] %v223_v60 }

// kernel: forwardone.5
= control target key start
LH: loop header
LB: loop body
LE: loop exit
PB: predicated region body
PF: predicated region fallthrough
CT: control target
= control target key end

     0   :  { %v511_v0 = vmov 0.0   ;;  %vm512_vm0 = vmmov 0   ;;  %vm58_vm1 = vcmask 261120   ;;  %vm143_vm2 = vcmask 523264   ;;  %s617_s4 = inlined_call_operand.vmem [shape: bf16[32,64], index: 4, kind: input, shape index: {}]   ;;  %s618_s0 = inlined_call_operand.vmem [shape: f32[8,32], index: 0, kind: input, shape index: {}]   ;;  %s619_s6 = inlined_call_operand.vmem [shape: bf16[64,32], index: 6, kind: input, shape index: {}]   ;;  %s620_s5 = inlined_call_operand.vmem [shape: f32[1,64], index: 5, kind: input, shape index: {}]   ;;  %s621_s7 = inlined_call_operand.vmem [shape: f32[1,32], index: 7, kind: input, shape index: {}]   ;;  %s622_s8 = inlined_call_operand.vmem [shape: f32[1,32], index: 8, kind: input, shape index: {}]   ;;  %s623_s1 = inlined_call_operand.vmem [shape: f32[8,32], index: 1, kind: input, shape index: {}]   ;;  %s624_s2 = inlined_call_operand.vmem [shape: f32[4,32], index: 2, kind: input, shape index: {}]   ;;  %s625_s3 = inlined_call_operand.vmem [shape: f32[1,4], index: 3, kind: input, shape index: {}]   ;;  %s626_s9 = inlined_call_operand.vmem [shape: f32[1,5], index: 9, kind: output, shape index: {}]  }
   0x1   :  { %466 = vmatprep.subr.bf16.mxu0 %v511_v0  ;;  %v505_v1 = vld [vmem:[%s617_s4 + $0x8] sm:$0xff]   ;;  %470 = vmatprep.mubr.msk.bf16.mxu0 %vm512_vm0, %v511_v0  ;;  %v506_v2 = vld [vmem:[%s617_s4] sm:$0xff]   ;;  %v507_v4 = vld [vmem:[%s619_s6 + $0x18] sm:$0xff]   ;;  %vm340_vm3 = vcmask 57344   ;;  %vm428_vm4 = vcmask 31744   ;;  %vm430_vm5 = vcmask 32768  }
   0x2   :  { %474 = vmatprep.subr.bf16.mxu1 %v511_v0  ;;  %482 = vmatprep.mubr.msk.bf16.mxu1 %vm512_vm0, %v511_v0  ;;  %v33_v3 = vld [vmem:[%s618_s0] sm:$0xff]  ;;  %v508_v5 = vld [vmem:[%s619_s6 + $0x10] sm:$0xff]   ;;  %v509_v7 = vld [vmem:[%s619_s6 + $0x8] sm:$0xff]  }
   0x3   :  { %467 = vmatpush3.bf16.msra.mxu0 %v505_v1  ;;  %v34_v6 = vpack.c.bf16 %v33_v3, %v33_v3  ;;  %475 = vmatpush3.bf16.msra.mxu1 %v507_v4  ;;  %v510_v8 = vld [vmem:[%s619_s6] sm:$0xff]  }
   0x4   :  { %468 = vmatprep.subr.bf16.mxu0 %v511_v0  ;;  %476 = vmatprep.subr.bf16.mxu1 %v511_v0  ;;  %v436_v9 = vld [vmem:[%s620_s5] ss:$0 sm:$0xff] }
   0x5   :  { %v440_v17 = vld [vmem:[%s621_s7] ss:$0 sm:$0xff] }
   0x6   :  { %v187_v21 = vld [vmem:[%s622_s8] sm:$0x1] }
   0x7   :  { %469 = vmatpush3.bf16.msra.mxu0 %v506_v2  ;;  %477 = vmatpush3.bf16.msra.mxu1 %v508_v5  ;;  %v264_v23 = vld [vmem:[%s623_s1] sm:$0xff] }
   0x8   :  { %486 = vmatprep.subr.mxu0 %v511_v0  ;;  %478 = vmatprep.subr.bf16.mxu1 %v511_v0  ;;  %v352_v25 = vld [vmem:[%s624_s2] sm:$0xf] }
   0x9   :  { %v353_v42 = vld [vmem:[%s625_s3] sm:$0x1] }
   0xa   :  { %471 = vmatmul.mubr.msk.bf16.vlgmr.msra.gmra.mxu0 %vm58_vm1, %v34_v6 }
   0xb   :  { %488 = vmatprep.mubr.msk.f32.mxu0 %vm512_vm0, %v511_v0  ;;  %479 = vmatpush3.bf16.msra.mxu1 %v509_v7 }
   0xc   :  { %480 = vmatprep.subr.bf16.mxu1 %v511_v0 }
   0xf   :  { %481 = vmatpush3.bf16.msra.mxu1 %v510_v8 }
  0xca   :  { %v96_v10 = vpop.f32.mrf.mxu0 }
  0xcb   :  { %v97_v11 = vadd.f32 %v436_v9, %v96_v10 }
  0xcc   :  { %v472_v12 = vpop.f32.mrf.mxu0 }
  0xcd   :  { %v102_v13 = vmax.f32 %v97_v11, 0.0 }
  0xce   :  { %v99_v14 = vpop.f32.mrf.mxu0 }
  0xcf   :  { %v103_v15 = vpack.c.bf16 %v102_v13, %v102_v13 }
  0xd0   :  { %v473_v16 = vpop.f32.mrf.mxu0 }
  0xd1   :  { %483 = vmatmul.mubr.msk.bf16.vlgmr.msra.gmra.mxu1 %vm143_vm2, %v103_v15 }
 0x191   :  { %v181_v18 = vpop.f32.mrf.mxu1 }
 0x192   :  { %v182_v19 = vadd.f32 %v440_v17, %v181_v18 }
 0x193   :  { %v484_v20 = vpop.f32.mrf.mxu1 }
 0x194   :  { %487 = vmatpush3.xpose.msk.msra.mxu0 %vm58_vm1, %v182_v19 }
 0x195   :  { %v184_v22 = vpop.f32.mrf.mxu1  ;;  %491 = vmatprep.subr.mxu0 %v511_v0 }
 0x197   :  { %v485_v24 = vpop.f32.mrf.mxu1  ;;  %489 = vmatmul.mubr.msk.f32.vlgmr.msra.gmra.mxu0 %vm58_vm1, %v187_v21 }
 0x198   :  { %492 = vmatpush3.xpose.msk.msra.mxu0 %vm58_vm1, %v264_v23  ;;  %493 = vmatprep.mubr.msk.f32.mxu0 %vm512_vm0, %v511_v0 }
 0x199   :  { %496 = vmatprep.subr.mxu0 %v511_v0 }
 0x19b   :  { %494 = vmatmul.mubr.msk.f32.vlgmr.msra.gmra.mxu0 %vm58_vm1, %v187_v21 }
 0x19c   :  { %498 = vmatprep.mubr.msk.f32.mxu0 %vm512_vm0, %v511_v0  ;;  %497 = vmatpush3.xpose.msk.msra.mxu0 %vm58_vm1, %v352_v25 }
 0x19f   :  { %499 = vmatmul.mubr.msk.f32.vlgmr.msra.gmra.mxu0 %vm58_vm1, %v187_v21 }
 0x257   :  { %v260_v26 = vpop.f32.mrf.mxu0 }
 0x259   :  { %v490_v27 = vpop.f32.mrf.mxu0 }
 0x25b   :  { %v334_v28 = vpop.f32.mrf.mxu0 }
 0x25c   :  { %v338_v29 = vsub.f32 %v260_v26, %v334_v28 }
 0x25d   :  { %v495_v30 = vpop.f32.mrf.mxu0 }
 0x25e   :  { %v339_v31 = vmul.f32 %v338_v29, %v338_v29 }
 0x25f   :  { %v423_v33 = vpop.f32.mrf.mxu0 }
 0x260   :  { %v341_v32 = vsel %vm340_vm3, %v339_v31, 0.0  ;;  %v424_v43 = vadd.f32 %v423_v33, %v353_v42 }
 0x261   :  { %342 = vadd.xlane.f32.xlu0 %v341_v32  ;;  %v500_v34 = vpop.f32.mrf.mxu0 }
 0x2ea   :  { %v343_v35 = vpop.xlane.xlu0 %342 }
 0x2eb   :  { %v344_v36 = vrot.slane %v343_v35, 4 }
 0x2ed   :  { %v345_v37 = vadd.f32 %v344_v36, %v343_v35 }
 0x2ef   :  { %v346_v38 = vrot.slane %v345_v37, 2 }
 0x2f1   :  { %v347_v39 = vadd.f32 %v346_v38, %v345_v37 }
 0x2f3   :  { %v348_v40 = vrot.slane %v347_v39, 1 }
 0x2f5   :  { %v349_v41 = vadd.f32 %v348_v40, %v347_v39 }
 0x2f7   :  { %501 = vpush %v349_v41 }
 0x328   :  { %s502_s27 = spop %501 }
 0x329   :  { %s351_s28 = smul.f32 0.125, %s502_s27 }
 0x32b   :  { %v427_v44 = vstv %s351_s28 }
 0x32c   :  { %v429_v45 = vsel %vm428_vm4, %v424_v43, %v427_v44 }
 0x32d   :  { %431 = vst.msk [vmem:[%s626_s9] sm:$0x1] %vm430_vm5, %v429_v45 }

</bundles_post_ra>
